<compile_context>
chip_gen: v6e
topology: v6e:2x2x1
jax: 0.10.0
libtpu: 0.0.40
codegen_flags: <defaults>
</compile_context>

<pallas_src>
import jax
import jax.numpy as jnp
from jax import lax
from jax.experimental import pallas as pl
from jax.experimental.pallas import tpu as pltpu


def _make_kernel(latent_dim, n_tail_layers):
    """Kernel closure: latent_dim offsets the in-lane one-hot, n_tail_layers is
    the number of Linear layers after the (fused) first one."""

    def kernel(idx_ref, zc_ref, wcat_ref, *rest):
        *wb_refs, out_ref = rest
        tm, kcat = zc_ref.shape

        ids = idx_ref[...]                                         # [tm, 1] i32
        # One-hot generated directly in lanes L..L+NB-1, so adding it to the
        # zero-padded z tile yields the concat [z | one_hot] with no in-kernel
        # reshuffle or gather.
        iota = lax.broadcasted_iota(jnp.int32, (tm, kcat), 1)
        one_hot = (iota == ids + latent_dim).astype(zc_ref.dtype)
        x_cat = zc_ref[...] + one_hot                               # [tm, L+NB]

        # First Linear; embedding lookup + projection + first bias are folded
        # into wcat (= vstack([Wz, emb_table @ We + b0])).
        h = jnp.dot(x_cat, wcat_ref[...], preferred_element_type=jnp.float32)
        if n_tail_layers > 0:                    # first layer is a hidden layer
            h = jnp.maximum(h, 0.0)

        # Remaining hidden layers (ReLU) + final Linear (no activation).
        for li in range(n_tail_layers):
            w_ref = wb_refs[2 * li]
            b_ref = wb_refs[2 * li + 1]
            h = (jnp.dot(h.astype(w_ref.dtype), w_ref[...],
                         preferred_element_type=jnp.float32) + b_ref[...])
            if li < n_tail_layers - 1:
                h = jnp.maximum(h, 0.0)

        out_ref[...] = h.astype(out_ref.dtype)

    return kernel


def conditional_autoencoder_decoder_ml(z, batch_index, emb_table, weights,
                                       biases, *, tm=1024, min_grid_steps=2,
                                       matmul_dtype=None, return_padded=False):
    """z: [B, latent_dim]; batch_index: [B] or [B, 1] int; emb_table: [NB, BD];
    weights[i]: [in_i, out_i]; biases[i]: [out_i]."""
    B, L = z.shape
    NB, BD = emb_table.shape
    out_ch = weights[-1].shape[1]
    f32 = jnp.float32
    mm_dtype = f32 if matmul_dtype is None else matmul_dtype

    idx = batch_index.reshape(B, 1).astype(jnp.int32)

    # ---- Fold embedding projection + first bias; fuse the first layer ------
    w0 = weights[0].astype(f32)
    wz, we = w0[:L, :], w0[L:, :]                 # assumes concat order [z, emb]
    b0 = biases[0].astype(f32).reshape(1, -1)
    EW = emb_table.astype(f32) @ we + b0          # [NB, H0]
    w_cat = jnp.concatenate([wz, EW], axis=0)     # [L+NB, H0]
    k_cat = L + NB
    # z padded with NB zero lanes; the kernel adds the one-hot into those lanes.
    z_cat = jnp.pad(z.astype(f32), ((0, 0), (0, NB)))

    # ---- Lane-dense output padding ------------------------------------------
    out_pad = max(128, ((out_ch + 127) // 128) * 128)
    pad_cols = out_pad - out_ch

    tail = []
    if len(weights) == 1:
        # First layer IS the output layer: pad its columns directly.
        w_cat = jnp.pad(w_cat, ((0, 0), (0, pad_cols)))
    else:
        for w, b in zip(weights[1:-1], biases[1:-1]):
            tail += [w.astype(mm_dtype), b.astype(f32).reshape(1, -1)]
        w_last = jnp.pad(weights[-1].astype(f32), ((0, 0), (0, pad_cols)))
        b_last = jnp.pad(biases[-1].astype(f32), (0, pad_cols)).reshape(1, -1)
        tail += [w_last.astype(mm_dtype), b_last]

    w_cat = w_cat.astype(mm_dtype)
    z_cat = z_cat.astype(mm_dtype)

    # ---- Batch tile: as big as possible, but keep >= min_grid_steps grid
    #      steps so both v7x TensorCores get work on the "parallel" axis. -----
    TM = min(tm, B)
    if min_grid_steps > 1 and pl.cdiv(B, TM) < min_grid_steps:
        TM = pl.cdiv(B, min_grid_steps)
    if TM < B:
        TM = min(max(8, ((TM + 7) // 8) * 8), B)   # sublane-aligned tile
    grid = (pl.cdiv(B, TM),)

    n_tail = len(tail) // 2
    kernel = _make_kernel(L, n_tail)

    in_specs = [
        pl.BlockSpec((TM, 1), lambda i: (i, 0)),        # batch_index tile
        pl.BlockSpec((TM, k_cat), lambda i: (i, 0)),    # [z | 0] tile
        pl.BlockSpec(w_cat.shape, lambda i: (0, 0)),    # fused 1st-layer W (resident)
    ] + [pl.BlockSpec(a.shape, lambda i: (0, 0)) for a in tail]
    # NOTE: the constant-index (resident) blocks could additionally use
    # pipeline_mode=pl.Buffered(1) to drop their second VMEM buffer; with a few
    # KiB of weights this is not worth the extra constraint here.

    # ---- Cost estimate for the reduced op set -------------------------------
    flops = 2 * B * k_cat * w_cat.shape[1]
    for wmat in tail[0::2]:
        flops += 2 * B * wmat.shape[0] * wmat.shape[1]
    kernel_inputs = [idx, z_cat, w_cat, *tail]
    bytes_accessed = sum(int(a.size) * a.dtype.itemsize for a in kernel_inputs)
    bytes_accessed += B * out_pad * jnp.dtype(z.dtype).itemsize

    out_padded = pl.pallas_call(
        kernel,
        out_shape=jax.ShapeDtypeStruct((B, out_pad), z.dtype),
        grid_spec=pl.GridSpec(
            grid=grid,
            in_specs=in_specs,
            out_specs=pl.BlockSpec((TM, out_pad), lambda i: (i, 0)),
        ),
        compiler_params=pltpu.CompilerParams(
            dimension_semantics=("parallel",),
        ),
        cost_estimate=pl.CostEstimate(
            flops=flops, transcendentals=0, bytes_accessed=bytes_accessed),
    )(idx, z_cat, w_cat, *tail)

    if return_padded:
        return out_padded
    return out_padded[:, :out_ch]


def reference(z, batch_index, emb_table, weights, biases):
    emb = emb_table[batch_index.reshape(-1)]
    x = jnp.concatenate([z, emb], axis=-1)
    n = len(weights)
    for i, (w, b) in enumerate(zip(weights, biases)):
        x = x @ w + b
        if i < n - 1:
            x = jnp.maximum(x, 0.0)
    return x


if __name__ == "__main__":
    key = jax.random.PRNGKey(0)
    keys = jax.random.split(key, 16)

    def build_params(latent_dim, batch_dim, hidden_dims, out_channels, pkeys):
        dims = [latent_dim + batch_dim] + list(hidden_dims) + [out_channels]
        ws, bs = [], []
        for li, (din, dout) in enumerate(zip(dims[:-1], dims[1:])):
            ws.append(jax.random.normal(pkeys[2 * li], (din, dout),
                                        jnp.float32) * 0.1)
            bs.append(jax.random.normal(pkeys[2 * li + 1], (dout,),
                                        jnp.float32) * 0.1)
        return ws, bs

    # ---- Config 1: the module's nominal shapes ------------------------------
    batch, latent_dim, batch_dim = 256, 16, 8
    hidden_dims, out_channels, num_batches = [32, 32], 24, 10

    z = jax.random.normal(keys[0], (batch, latent_dim), jnp.float32)
    batch_index = jax.random.randint(keys[1], (batch, 1), 0, num_batches,
                                     dtype=jnp.int32)
    emb_table = jax.random.normal(keys[2], (num_batches, batch_dim),
                                  jnp.float32) * 0.1
    weights, biases = build_params(latent_dim, batch_dim, hidden_dims,
                                   out_channels, keys[3:])

    out = conditional_autoencoder_decoder_ml(z, batch_index, emb_table,
                                             weights, biases)
    jax.block_until_ready(out)
    ref = reference(z, batch_index, emb_table, weights, biases)
    assert out.shape == (batch, out_channels)
    err = float(jnp.max(jnp.abs(out - ref)))
    assert jnp.allclose(out, ref, atol=1e-4, rtol=1e-4), err

    # ---- Config 2: ragged batch (B % TM != 0), smaller tile ----------------
    b2 = 250
    z2 = jax.random.normal(keys[10], (b2, latent_dim), jnp.float32)
    bi2 = jax.random.randint(keys[11], (b2,), 0, num_batches, dtype=jnp.int32)
    out2 = conditional_autoencoder_decoder_ml(z2, bi2, emb_table, weights,
                                              biases, tm=128)
    jax.block_until_ready(out2)
    ref2 = reference(z2, bi2, emb_table, weights, biases)
    assert out2.shape == (b2, out_channels)
    err2 = float(jnp.max(jnp.abs(out2 - ref2)))
    assert jnp.allclose(out2, ref2, atol=1e-4, rtol=1e-4), err2

    # ---- Config 3: no hidden layers (first layer IS the output layer) ------
    w3, b3 = build_params(latent_dim, batch_dim, [], out_channels, keys[12:])
    out3 = conditional_autoencoder_decoder_ml(z, batch_index, emb_table, w3, b3)
    jax.block_until_ready(out3)
    ref3 = reference(z, batch_index, emb_table, w3, b3)
    err3 = float(jnp.max(jnp.abs(out3 - ref3)))
    assert jnp.allclose(out3, ref3, atol=1e-4, rtol=1e-4), err3

    print("KERNEL_OK")
</pallas_src>

<mosaic_0001>
module attributes {stable_mosaic.version = 11 : i64} {
  func.func @kernel(%arg0: i32, %arg1: memref<128x1xi32, #tpu.memory_space<vmem>>, %arg2: memref<128x26xf32, #tpu.memory_space<vmem>>, %arg3: memref<26x32xf32, #tpu.memory_space<vmem>>, %arg4: memref<32x32xf32, #tpu.memory_space<vmem>>, %arg5: memref<1x32xf32, #tpu.memory_space<vmem>>, %arg6: memref<32x128xf32, #tpu.memory_space<vmem>>, %arg7: memref<1x128xf32, #tpu.memory_space<vmem>>, %arg8: memref<128x128xf32, #tpu.memory_space<vmem>>) attributes {dimension_semantics = [#tpu.dimension_semantics<parallel>], iteration_bounds = array<i64: 2>, scalar_prefetch = 0 : i64, scratch_operands = 0 : i64, tpu.core_type = #tpu.core_type<tc>, window_params = [{transform_indices = @transform_0, window_bounds = array<i64: 128, 1>}, {transform_indices = @transform_1, window_bounds = array<i64: 128, 26>}, {pipeline_mode = #tpu.pipeline_mode<synchronous>, transform_indices = @transform_2, window_bounds = array<i64: 26, 32>}, {pipeline_mode = #tpu.pipeline_mode<synchronous>, transform_indices = @transform_3, window_bounds = array<i64: 32, 32>}, {pipeline_mode = #tpu.pipeline_mode<synchronous>, transform_indices = @transform_4, window_bounds = array<i64: 1, 32>}, {pipeline_mode = #tpu.pipeline_mode<synchronous>, transform_indices = @transform_5, window_bounds = array<i64: 32, 128>}, {pipeline_mode = #tpu.pipeline_mode<synchronous>, transform_indices = @transform_6, window_bounds = array<i64: 1, 128>}, {transform_indices = @transform_7, window_bounds = array<i64: 128, 128>}]} {
    %c0 = arith.constant 0 : index
    %c0_0 = arith.constant 0 : index
    %0 = vector.load %arg1[%c0, %c0_0] : memref<128x1xi32, #tpu.memory_space<vmem>>, vector<128x1xi32>
    %1 = tpu.iota {dimensions = array<i32: 1>} : vector<128x26xi32>
    %c16_i32 = arith.constant 16 : i32
    %2 = vector.broadcast %c16_i32 : i32 to vector<128x1xi32>
    %3 = arith.addi %0, %2 : vector<128x1xi32>
    %4 = vector.broadcast %3 : vector<128x1xi32> to vector<128x26xi32>
    %5 = arith.cmpi eq, %1, %4 : vector<128x26xi32>
    %6 = arith.extui %5 : vector<128x26xi1> to vector<128x26xi32>
    %7 = arith.sitofp %6 : vector<128x26xi32> to vector<128x26xf32>
    %c0_1 = arith.constant 0 : index
    %c0_2 = arith.constant 0 : index
    %8 = vector.load %arg2[%c0_1, %c0_2] : memref<128x26xf32, #tpu.memory_space<vmem>>, vector<128x26xf32>
    %9 = arith.addf %8, %7 : vector<128x26xf32>
    %c0_3 = arith.constant 0 : index
    %c0_4 = arith.constant 0 : index
    %10 = vector.load %arg3[%c0_3, %c0_4] : memref<26x32xf32, #tpu.memory_space<vmem>>, vector<26x32xf32>
    %cst = arith.constant dense<0.000000e+00> : vector<128x32xf32>
    %11 = tpu.matmul %9, %10, %cst {dimension_numbers = #tpu.dot_dimension_numbers<[1], [0], [0], [1], [0, 0, 1, 1], [], []>} : vector<128x26xf32>, vector<26x32xf32>, vector<128x32xf32> -> vector<128x32xf32>
    %cst_5 = arith.constant 0.000000e+00 : f32
    %12 = vector.broadcast %cst_5 : f32 to vector<128x32xf32>
    %13 = arith.maximumf %11, %12 : vector<128x32xf32>
    %c0_6 = arith.constant 0 : index
    %c0_7 = arith.constant 0 : index
    %14 = vector.load %arg4[%c0_6, %c0_7] : memref<32x32xf32, #tpu.memory_space<vmem>>, vector<32x32xf32>
    %cst_8 = arith.constant dense<0.000000e+00> : vector<128x32xf32>
    %15 = tpu.matmul %13, %14, %cst_8 {dimension_numbers = #tpu.dot_dimension_numbers<[1], [0], [0], [1], [0, 0, 1, 1], [], []>} : vector<128x32xf32>, vector<32x32xf32>, vector<128x32xf32> -> vector<128x32xf32>
    %c0_9 = arith.constant 0 : index
    %c0_10 = arith.constant 0 : index
    %16 = vector.load %arg5[%c0_9, %c0_10] : memref<1x32xf32, #tpu.memory_space<vmem>>, vector<1x32xf32>
    %17 = vector.broadcast %16 : vector<1x32xf32> to vector<128x32xf32>
    %18 = arith.addf %15, %17 : vector<128x32xf32>
    %cst_11 = arith.constant 0.000000e+00 : f32
    %19 = vector.broadcast %cst_11 : f32 to vector<128x32xf32>
    %20 = arith.maximumf %18, %19 : vector<128x32xf32>
    %c0_12 = arith.constant 0 : index
    %c0_13 = arith.constant 0 : index
    %21 = vector.load %arg6[%c0_12, %c0_13] : memref<32x128xf32, #tpu.memory_space<vmem>>, vector<32x128xf32>
    %cst_14 = arith.constant dense<0.000000e+00> : vector<128x128xf32>
    %22 = tpu.matmul %20, %21, %cst_14 {dimension_numbers = #tpu.dot_dimension_numbers<[1], [0], [0], [1], [0, 0, 1, 1], [], []>} : vector<128x32xf32>, vector<32x128xf32>, vector<128x128xf32> -> vector<128x128xf32>
    %c0_15 = arith.constant 0 : index
    %c0_16 = arith.constant 0 : index
    %23 = vector.load %arg7[%c0_15, %c0_16] : memref<1x128xf32, #tpu.memory_space<vmem>>, vector<1x128xf32>
    %24 = vector.broadcast %23 : vector<1x128xf32> to vector<128x128xf32>
    %25 = arith.addf %22, %24 : vector<128x128xf32>
    %c0_17 = arith.constant 0 : index
    %c0_18 = arith.constant 0 : index
    %26 = vector.load %arg8[%c0_17, %c0_18] : memref<128x128xf32, #tpu.memory_space<vmem>>, vector<128x128xf32>
    tpu.vector_store %arg8[%c0_17, %c0_18], %25 {strides = array<i32>} : memref<128x128xf32, #tpu.memory_space<vmem>>, vector<128x128xf32>,
    return
  }
  func.func @transform_0(%arg0: i32) -> (i32, i32) {
    %c0_i32 = arith.constant 0 : i32
    %c0_i32_0 = arith.constant 0 : i32
    return %arg0, %c0_i32 : i32, i32
  }
  func.func @transform_1(%arg0: i32) -> (i32, i32) {
    %c0_i32 = arith.constant 0 : i32
    %c0_i32_0 = arith.constant 0 : i32
    return %arg0, %c0_i32 : i32, i32
  }
  func.func @transform_2(%arg0: i32) -> (i32, i32) {
    %c0_i32 = arith.constant 0 : i32
    %c0_i32_0 = arith.constant 0 : i32
    %c0_i32_1 = arith.constant 0 : i32
    return %c0_i32, %c0_i32_0 : i32, i32
  }
  func.func @transform_3(%arg0: i32) -> (i32, i32) {
    %c0_i32 = arith.constant 0 : i32
    %c0_i32_0 = arith.constant 0 : i32
    %c0_i32_1 = arith.constant 0 : i32
    return %c0_i32, %c0_i32_0 : i32, i32
  }
  func.func @transform_4(%arg0: i32) -> (i32, i32) {
    %c0_i32 = arith.constant 0 : i32
    %c0_i32_0 = arith.constant 0 : i32
    %c0_i32_1 = arith.constant 0 : i32
    return %c0_i32, %c0_i32_0 : i32, i32
  }
  func.func @transform_5(%arg0: i32) -> (i32, i32) {
    %c0_i32 = arith.constant 0 : i32
    %c0_i32_0 = arith.constant 0 : i32
    %c0_i32_1 = arith.constant 0 : i32
    return %c0_i32, %c0_i32_0 : i32, i32
  }
  func.func @transform_6(%arg0: i32) -> (i32, i32) {
    %c0_i32 = arith.constant 0 : i32
    %c0_i32_0 = arith.constant 0 : i32
    %c0_i32_1 = arith.constant 0 : i32
    return %c0_i32, %c0_i32_0 : i32, i32
  }
  func.func @transform_7(%arg0: i32) -> (i32, i32) {
    %c0_i32 = arith.constant 0 : i32
    %c0_i32_0 = arith.constant 0 : i32
    return %arg0, %c0_i32 : i32, i32
  }
}

</mosaic_0001>

<bundles_post_ra>
// kernel: tpu_custom_call.1
= control target key start
LH: loop header
LB: loop body
LE: loop exit
PB: predicated region body
PF: predicated region fallthrough
CT: control target
= control target key end

     0   :  { %12 = vsyncpa [#allocation3], 0  ;;  %s1907_s0 = inlined_call_operand.vmem [shape: s32[256,1], index: 0, kind: input, shape index: {}]   ;;  %s1908_s1 = inlined_call_operand.vmem [shape: f32[256,26], index: 1, kind: input, shape index: {}]   ;;  %s1909_s2 = inlined_call_operand.vmem [shape: f32[26,32], index: 2, kind: input, shape index: {}]   ;;  %s1910_s3 = inlined_call_operand.vmem [shape: f32[32,32], index: 3, kind: input, shape index: {}]   ;;  %s1911_s4 = inlined_call_operand.vmem [shape: f32[1,32], index: 4, kind: input, shape index: {}]   ;;  %s1912_s5 = inlined_call_operand.vmem [shape: f32[32,128], index: 5, kind: input, shape index: {}]   ;;  %s1913_s6 = inlined_call_operand.vmem [shape: f32[1,128], index: 6, kind: input, shape index: {}]   ;;  %s1914_s7 = inlined_call_operand.hbm [shape: f32[256,128], index: 7, kind: output, shape index: {}]  }
   0x1   :  { %14 = vsyncpa [#allocation3 + $0x1], 0  ;;  %s1609_s24 = smov 0   ;;  %s1611_s25 = smov 0  }
   0x2   :  { %s1613_s26 = smov 0   ;;  %s1615_s27 = smov 0  }
   0x3 LB: > { %s1630_s28 = sadd.s32 4294967295, %s1562_s27   ;;  %s1211_s29 = sadd.s32 4294967294, %s1562_s27   ;;  %s1562_s27 = sphi %s1615_s27, %s1920_s27   ;;  %s1558_s26 = sphi %s1613_s26, %s1919_s26   ;;  %s1554_s25 = sphi %s1611_s25, %s1918_s25   ;;  %s1550_s24 = sphi %s1609_s24, %s1917_s24  }
   0x4   : > { %s1634_s30 = sadd.s32 1, %s1562_s27   ;;  %s184_s8 = sadd.s32 1, %s1558_s26 }
   0x5   : > { %s181_s9 = ssub.s32 %s1562_s27, %s1634_s30  ;;  %p194_p0 = scmp.ne.s32.totalorder %s1558_s26, %s1554_s25 }
   0x6   : > { %p182_p1 = scmp.eq.s32.totalorder %s181_s9, 0  ;;  %p195_p2 = scmp.eq.s32.totalorder %s1630_s28, 1 }
   0x7   : > { %p200_p3 = scmp.ne.s32.totalorder %s1554_s25, %s1550_s24  ;;  %p201_p4 = scmp.eq.s32.totalorder %s1211_s29, 1 }
   0x8   : > { %s1645_s10 = scalar_select %p182_p1, %s1558_s26, %s184_s8  }
   0x9   : > { %p1647_p5 = por %p195_p2, %p194_p0  ;;  %p1651_p6 = por %p201_p4, %p200_p3 }
   0xa   : > { %p1214_p7 = scmp.ge.s32.totalorder %s1562_s27, 1  ;;  %p252_p8 = scmp.lt.s32.totalorder %s1562_s27, 3 }
   0xc   : > { %p253_p9 = pnand %p1214_p7, %p252_p8 }
   0xd   : > { %s1216_s13 = sshll.u32 (!%p253_p9), %s1630_s28, 4  ;;  %s1292_s29 = sshll.u32 (!%p253_p9), %s1630_s28, 11 }
   0xe   : > { %256 = sbr.rel (%p253_p9) target bundleno = 794 (0x31a), region = 48  ;;  %p290_p10 = scmp.lt.s32.totalorder (!%p253_p9), %s1216_s13, 31 }
   0xf   : > { %s1859_s16 = scalar_lea.hbm (!%p253_p9), %s1914_s7, %s1292_s29 }
  0x13   : > { %v1564_v0 = vmov 0   ;;  %s1922_s13 = smov (!%p290_p10, %s1216_s13), 31  ;;  %v467_v1 = vld [vmem:[%s1909_s2 + $0x18] sm:$0x3]  ;;  %vm517_vm0 = vcmask 1041408   ;;  %v466_v12 = vld [vmem:[%s1909_s2 + $0x10] sm:$0xff]  ;;  %v318_v38 = vlaneseq }
  0x14   : > { %1501 = vset.pattern.permute.xlu1 %v1564_v0  ;;  %1500 = vset.pattern.permute.xlu0 %v1564_v0  ;;  %s1217_s14 = sshll.u32 %s1922_s13, 3  ;;  %v465_v13 = vld [vmem:[%s1909_s2 + $0x8] sm:$0xff]  ;;  %v464_v18 = vld [vmem:[%s1909_s2] sm:$0xff]  ;;  %v1699_v37 = vld [vmem:[%s1910_s3 + $0x18] sm:$0xff]  ;;  %v1565_v43 = vmov 0.0   ;;  %vm468_vm3 = vcmask 211968  }
  0x15   : > { %s1669_s19 = scalar_lea.vmem %s1907_s0, %s1217_s14  ;;  %1353 = vmatprep.subr.msk.mxu0 %vm517_vm0, %v467_v1  ;;  %1449 = vmatprep.subr.msk.mxu1 %vm517_vm0, %v467_v1  ;;  %s1707_s18 = scalar_lea.vmem %s1908_s1, %s1217_s14  ;;  %v1709_v39 = vand.u32 127, %v318_v38 }
  0x16   : > { %v304_v2 = vld [vmem:[%s1669_s19 + $0x10] sm:$0xff]  ;;  %v302_v3 = vld [vmem:[%s1669_s19] sm:$0xff]  ;;  %v305_v4 = vld [vmem:[%s1669_s19 + $0x18] sm:$0xff]  ;;  %1354 = vmatpush3.msk.msra.mxu0 %vm517_vm0, %v467_v1  ;;  %1453 = vmatpush3.msk.msra.mxu1 %vm517_vm0, %v467_v1 }
  0x17   : > { %v322_v5 = vadd.s32 16, %v304_v2  ;;  %v320_v6 = vadd.s32 16, %v302_v3  ;;  %v303_v7 = vld [vmem:[%s1669_s19 + $0x8] sm:$0xff]  ;;  %v323_v8 = vadd.s32 16, %v305_v4  ;;  %v306_v11 = vld [vmem:[%s1669_s19 + $0x20] sm:$0xff]  ;;  %1355 = vmatprep.subr.mxu0 %v466_v12  ;;  %1450 = vmatprep.subr.mxu1 %v466_v12  ;;  %v309_v16 = vld [vmem:[%s1669_s19 + $0x38] sm:$0xff] }
  0x18   : > { %v321_v9 = vadd.s32 16, %v303_v7  ;;  %v307_v10 = vld [vmem:[%s1669_s19 + $0x28] sm:$0xff]  ;;  %v324_v15 = vadd.s32 16, %v306_v11  ;;  %v308_v17 = vld [vmem:[%s1669_s19 + $0x30] sm:$0xff]  ;;  %1356 = vmatpush3.msra.mxu0 %v466_v12  ;;  %1454 = vmatpush3.msra.mxu1 %v466_v12  ;;  %v327_v19 = vadd.s32 16, %v309_v16  ;;  %v310_v22 = vld [vmem:[%s1669_s19 + $0x40] sm:$0xff] }
  0x19   : > { %343 = vperm.xlu1 %1501, %v322_v5   ;;  %337 = vperm.xlu0 %1500, %v320_v6   ;;  %v325_v14 = vadd.s32 16, %v307_v10  ;;  %v326_v20 = vadd.s32 16, %v308_v17  ;;  %v311_v21 = vld [vmem:[%s1669_s19 + $0x48] sm:$0xff]  ;;  %v328_v24 = vadd.s32 16, %v310_v22  ;;  %v313_v25 = vld [vmem:[%s1669_s19 + $0x58] sm:$0xff]  ;;  %v312_v26 = vld [vmem:[%s1669_s19 + $0x50] sm:$0xff] }
  0x1a   : > { %1357 = vmatprep.subr.mxu0 %v465_v13  ;;  %1451 = vmatprep.subr.mxu1 %v465_v13  ;;  %v329_v23 = vadd.s32 16, %v311_v21  ;;  %v331_v27 = vadd.s32 16, %v313_v25  ;;  %v330_v28 = vadd.s32 16, %v312_v26  ;;  %v315_v29 = vld [vmem:[%s1669_s19 + $0x68] sm:$0xff]  ;;  %v314_v30 = vld [vmem:[%s1669_s19 + $0x60] sm:$0xff]  ;;  %v317_v33 = vld [vmem:[%s1669_s19 + $0x78] sm:$0xff] }
  0x1b   : > { %1358 = vmatpush3.msra.mxu0 %v465_v13  ;;  %1455 = vmatpush3.msra.mxu1 %v465_v13  ;;  %v333_v31 = vadd.s32 16, %v315_v29  ;;  %v332_v32 = vadd.s32 16, %v314_v30  ;;  %v316_v34 = vld [vmem:[%s1669_s19 + $0x70] sm:$0xff]  ;;  %v335_v35 = vadd.s32 16, %v317_v33  ;;  %v432_v42 = vld [vmem:[%s1707_s18] sm:$0xff]  ;;  %v433_v49 = vld [vmem:[%s1707_s18 + $0x8] sm:$0xff] }
  0x1c   : > { %1359 = vmatprep.subr.mxu0 %v464_v18  ;;  %1452 = vmatprep.subr.mxu1 %v464_v18  ;;  %v334_v36 = vadd.s32 16, %v316_v34  ;;  %v434_v45 = vld [vmem:[%s1707_s18 + $0x10] sm:$0xff]  ;;  %v435_v54 = vld [vmem:[%s1707_s18 + $0x18] sm:$0xff]  ;;  %v436_v57 = vld [vmem:[%s1707_s18 + $0x20] sm:$0xff]  ;;  %s286_s19 = sand.u32 1, %s1554_s25  }
  0x1d   : > { %346 = vperm.xlu1 %1501, %v323_v8   ;;  %340 = vperm.xlu0 %1500, %v321_v9   ;;  %v437_v62 = vld [vmem:[%s1707_s18 + $0x28] sm:$0xff]  ;;  %v438_v1 = vld [vmem:[%s1707_s18 + $0x30] sm:$0xff]  ;;  %v439_v6 = vld [vmem:[%s1707_s18 + $0x38] sm:$0xff]  ;;  %s1215_s20 = sshll.u32 %s286_s19, 7  ;;  %s1867_s28 = scalar_lea.sflag [#allocation3], %s286_s19 }
  0x1e   : > { %1360 = vmatpush3.msra.mxu0 %v464_v18  ;;  %1456 = vmatpush3.msra.mxu1 %v464_v18  ;;  %v441_v8 = vld [vmem:[%s1707_s18 + $0x48] sm:$0xff]  ;;  %v440_v11 = vld [vmem:[%s1707_s18 + $0x40] sm:$0xff]  ;;  %v443_v17 = vld [vmem:[%s1707_s18 + $0x58] sm:$0xff]  ;;  %s1838_s23 = scalar_lea.vmem [#allocation2], %s1215_s20 }
  0x1f   : > { %1385 = vmatprep.subr.mxu1 %v1699_v37  ;;  %v684_v21 = vld [vmem:[%s1910_s3 + $0x10] sm:$0xff]  ;;  %v683_v26 = vld [vmem:[%s1910_s3 + $0x8] sm:$0xff]  ;;  %v444_v29 = vld [vmem:[%s1707_s18 + $0x60] sm:$0xff]  ;;  %s1137_s8 = sshll.u32 %s1838_s23, 4  ;;  %s1861_s8 = int_to_ptr.vmem [resolvable:$true] %s1137_s8 }
  0x20   : > { %s1502_s17 = scalar_lea.vmem %s1861_s8, 2048 }
  0x21   : > { %352 = vperm.xlu1 %1501, %v325_v14   ;;  %349 = vperm.xlu0 %1500, %v324_v15   ;;  %p1503_p11 = scmp.ne.s32.totalorder %s1861_s8, %s1502_s17 }
  0x23   : > { %p1504_p12 = pnand %p1503_p11, %p1647_p5 }
  0x25   : > { %358 = vperm.xlu1 %1501, %v327_v19   ;;  %355 = vperm.xlu0 %1500, %v326_v20   ;;  %v442_v19 = vld [vmem:[%s1707_s18 + $0x50] sm:$0xff]  ;;  %p1505_p13 = pneg %p1504_p12 }
  0x29   : > { %364 = vperm.xlu1 %1501, %v329_v23   ;;  %361 = vperm.xlu0 %1500, %v328_v24  }
  0x2d   : > { %370 = vperm.xlu1 %1501, %v331_v27   ;;  %367 = vperm.xlu0 %1500, %v330_v28   ;;  %v445_v27 = vld [vmem:[%s1707_s18 + $0x68] sm:$0xff] }
  0x31   : > { %376 = vperm.xlu1 %1501, %v333_v31   ;;  %373 = vperm.xlu0 %1500, %v332_v32  }
  0x35   : > { %382 = vperm.xlu1 %1501, %v335_v35   ;;  %379 = vperm.xlu0 %1500, %v334_v36   ;;  %v447_v35 = vld [vmem:[%s1707_s18 + $0x78] sm:$0xff] }
  0x94   : > { %v344_v40 = vpop.permute.xlu1 %343  ;;  %v338_v41 = vpop.permute.xlu0 %337 }
  0x95   : > { %vm386_vm1 = vcmp.eq.s32.totalorder %v1709_v39, %v344_v40  ;;  %vm384_vm2 = vcmp.eq.s32.totalorder %v1709_v39, %v338_v41 }
  0x96   : > { %v1220_v44 = vsel %vm384_vm2, 1.0, %v1565_v43  ;;  %v1222_v46 = vsel %vm386_vm1, 1.0, %v1565_v43  ;;  %vm693_vm2 = vcmask 261120  }
  0x97   : > { %v448_v47 = vadd.f32 %v1220_v44, %v432_v42  ;;  %v450_v51 = vadd.f32 %v1222_v46, %v434_v45  ;;  %v682_v45 = vld [vmem:[%s1910_s3] sm:$0xff]  ;;  %v904_v46 = vld [vmem:[%s1912_s5 + $0x8] sm:$0xff] }
  0x98   : > { %v347_v48 = vpop.permute.xlu1 %346  ;;  %v341_v50 = vpop.permute.xlu0 %340 }
  0x99   : > { %vm387_vm4 = vcmp.eq.s32.totalorder %v1709_v39, %v347_v48  ;;  %vm385_vm5 = vcmp.eq.s32.totalorder %v1709_v39, %v341_v50  ;;  %1361 = vmatprep.mubr.msk.f32.mxu0 %vm468_vm3, %v448_v47 }
  0x9a   : > { %v1221_v52 = vsel %vm385_vm5, 1.0, %v1565_v43  ;;  %v1223_v55 = vsel %vm387_vm4, 1.0, %v1565_v43 }
  0x9b   : > { %v449_v53 = vadd.f32 %v1221_v52, %v433_v49  ;;  %v451_v60 = vadd.f32 %v1223_v55, %v435_v54 }
  0x9c   : > { %v353_v56 = vpop.permute.xlu1 %352  ;;  %v350_v58 = vpop.permute.xlu0 %349 }
  0x9d   : > { %vm389_vm6 = vcmp.eq.s32.totalorder %v1709_v39, %v353_v56  ;;  %vm388_vm7 = vcmp.eq.s32.totalorder %v1709_v39, %v350_v58  ;;  %1362 = vmatmul.mubr.msk.f32.vlgmr.msra.gmra.mxu0 %vm468_vm3, %v449_v53 }
  0x9e   : > { %v1224_v59 = vsel %vm388_vm7, 1.0, %v1565_v43  ;;  %1364 = vmatprep.mubr.msk.f32.mxu0 %vm468_vm3, %v450_v51  ;;  %v1225_v63 = vsel %vm389_vm6, 1.0, %v1565_v43 }
  0x9f   : > { %v452_v61 = vadd.f32 %v1224_v59, %v436_v57  ;;  %v453_v4 = vadd.f32 %v1225_v63, %v437_v62 }
  0xa0   : > { %v359_v0 = vpop.permute.xlu1 %358  ;;  %v356_v2 = vpop.permute.xlu0 %355 }
  0xa1   : > { %vm391_vm8 = vcmp.eq.s32.totalorder %v1709_v39, %v359_v0  ;;  %vm390_vm9 = vcmp.eq.s32.totalorder %v1709_v39, %v356_v2  ;;  %1365 = vmatmul.mubr.msk.f32.gmra.mxu0 %vm468_vm3, %v451_v60 }
  0xa2   : > { %v1226_v3 = vsel %vm390_vm9, 1.0, %v1565_v43  ;;  %1367 = vmatprep.mubr.msk.f32.mxu0 %vm468_vm3, %v452_v61  ;;  %v1227_v7 = vsel %vm391_vm8, 1.0, %v1565_v43 }
  0xa3   : > { %v454_v5 = vadd.f32 %v1226_v3, %v438_v1  ;;  %v455_v14 = vadd.f32 %v1227_v7, %v439_v6 }
  0xa4   : > { %v365_v9 = vpop.permute.xlu1 %364  ;;  %v362_v10 = vpop.permute.xlu0 %361 }
  0xa5   : > { %vm393_vm10 = vcmp.eq.s32.totalorder %v1709_v39, %v365_v9  ;;  %vm392_vm11 = vcmp.eq.s32.totalorder %v1709_v39, %v362_v10  ;;  %1368 = vmatmul.mubr.msk.f32.gmra.mxu0 %vm468_vm3, %v453_v4 }
  0xa6   : > { %v1229_v12 = vsel %vm393_vm10, 1.0, %v1565_v43  ;;  %v1228_v13 = vsel %vm392_vm11, 1.0, %v1565_v43  ;;  %1370 = vmatprep.mubr.msk.f32.mxu0 %vm468_vm3, %v454_v5 }
  0xa7   : > { %v457_v15 = vadd.f32 %v1229_v12, %v441_v8  ;;  %v456_v16 = vadd.f32 %v1228_v13, %v440_v11 }
  0xa8   : > { %v371_v18 = vpop.permute.xlu1 %370  ;;  %v368_v20 = vpop.permute.xlu0 %367 }
  0xa9   : > { %vm395_vm12 = vcmp.eq.s32.totalorder %v1709_v39, %v371_v18  ;;  %vm394_vm13 = vcmp.eq.s32.totalorder %v1709_v39, %v368_v20  ;;  %1371 = vmatmul.mubr.msk.f32.gmra.mxu0 %vm468_vm3, %v455_v14  ;;  %1373 = vmatprep.mubr.msk.f32.mxu1 %vm468_vm3, %v456_v16  ;;  %v1253_v16 = vld [vmem:[%s1911_s4] ss:$0 sm:$0xff] }
  0xaa   : > { %v1231_v22 = vsel %vm395_vm12, 1.0, %v1565_v43  ;;  %v1230_v23 = vsel %vm394_vm13, 1.0, %v1565_v43  ;;  %1374 = vmatmul.mubr.msk.f32.vlgmr.msra.gmra.mxu1 %vm468_vm3, %v457_v15  ;;  %v903_v15 = vld [vmem:[%s1912_s5] sm:$0xff] }
  0xab   : > { %v459_v24 = vadd.f32 %v1231_v22, %v443_v17  ;;  %v458_v25 = vadd.f32 %v1230_v23, %v442_v19  ;;  %1386 = vmatpush3.msra.mxu1 %v1699_v37  ;;  %v446_v37 = vld [vmem:[%s1707_s18 + $0x70] sm:$0xff]  ;;  %s1566_s18 = smov [#allocation2]  }
  0xac   : > { %v377_v28 = vpop.permute.xlu1 %376  ;;  %v374_v30 = vpop.permute.xlu0 %373  ;;  %1387 = vmatprep.subr.mxu1 %v684_v21  ;;  %s1506_s13 = sshll.u32 %s1566_s18, 4  ;;  %s1507_s13 = int_to_ptr.vmem [resolvable:$false] %s1506_s13 }
  0xad   : > { %vm397_vm14 = vcmp.eq.s32.totalorder %v1709_v39, %v377_v28  ;;  %vm396_vm15 = vcmp.eq.s32.totalorder %v1709_v39, %v374_v30  ;;  %1376 = vmatprep.mubr.msk.f32.mxu1 %vm468_vm3, %v458_v25  ;;  %1388 = vmatpush3.msra.mxu1 %v684_v21  ;;  %s1508_s14 = scalar_lea.vmem %s1507_s13, 4096  ;;  %p1509_p0 = scmp.lt.s32.totalorder %s1861_s8, %s1507_s13 }
  0xae   : > { %v1233_v31 = vsel %vm397_vm14, 1.0, %v1565_v43  ;;  %v1232_v32 = vsel %vm396_vm15, 1.0, %v1565_v43  ;;  %1377 = vmatmul.mubr.msk.f32.gmra.mxu1 %vm468_vm3, %v459_v24  ;;  %1389 = vmatprep.subr.mxu1 %v683_v26  ;;  %p1510_p1 = scmp.lt.s32.totalorder %s1508_s14, %s1502_s17 }
  0xaf   : > { %v461_v33 = vadd.f32 %v1233_v31, %v445_v27  ;;  %v460_v34 = vadd.f32 %v1232_v32, %v444_v29  ;;  %1390 = vmatpush3.msra.mxu1 %v683_v26 }
  0xb0   : > { %v383_v36 = vpop.permute.xlu1 %382  ;;  %v380_v38 = vpop.permute.xlu0 %379  ;;  %1391 = vmatprep.subr.mxu1 %v682_v45  ;;  %p1511_p2 = por %p1510_p1, %p1509_p0 }
  0xb1   : > { %vm399_vm0 = vcmp.eq.s32.totalorder %v1709_v39, %v383_v36  ;;  %vm398_vm1 = vcmp.eq.s32.totalorder %v1709_v39, %v380_v38  ;;  %1379 = vmatprep.mubr.msk.f32.mxu1 %vm468_vm3, %v460_v34  ;;  %1392 = vmatpush3.msra.mxu1 %v682_v45  ;;  %v906_v39 = vld [vmem:[%s1912_s5 + $0x18] sm:$0xff] }
  0xb2   : > { %v1235_v40 = vsel %vm399_vm0, 1.0, %v1565_v43  ;;  %v1234_v41 = vsel %vm398_vm1, 1.0, %v1565_v43  ;;  %1380 = vmatmul.mubr.msk.f32.gmra.mxu1 %vm468_vm3, %v461_v33  ;;  %v905_v43 = vld [vmem:[%s1912_s5 + $0x10] sm:$0xff]  ;;  %1417 = vmatprep.subr.mxu0 %v906_v39  ;;  %p1512_p3 = pnand %p1511_p2, %p1505_p13 }
  0xb3   : > { %v463_v42 = vadd.f32 %v1235_v40, %v447_v35  ;;  %v462_v44 = vadd.f32 %v1234_v41, %v446_v37  ;;  %1418 = vmatpush3.msra.mxu0 %v906_v39 }
  0xb4   : > { %1419 = vmatprep.subr.mxu0 %v905_v43 }
  0xb5   : > { %1382 = vmatprep.mubr.msk.f32.mxu1 %vm468_vm3, %v462_v44  ;;  %1420 = vmatpush3.msra.mxu0 %v905_v43 }
  0xb6   : > { %1383 = vmatmul.mubr.msk.f32.gmra.mxu1 %vm468_vm3, %v463_v42  ;;  %1421 = vmatprep.subr.mxu0 %v904_v46 }
  0xb7   : > { %1422 = vmatpush3.msra.mxu0 %v904_v46 }
  0xb8   : > { %1423 = vmatprep.subr.mxu0 %v903_v15 }
  0xb9   : > { %1424 = vmatpush3.msra.mxu0 %v903_v15 }
 0x15d   : > { %v1363_v47 = vpop.f32.mrf.mxu0 }
 0x15e   : > { %v667_v50 = vmax.f32 %v1363_v47, 0.0 }
 0x15f   : > { %v587_v48 = vpop.f32.mrf.mxu0 }
 0x160   : > { %v666_v49 = vmax.f32 %v587_v48, 0.0 }
 0x161   : > { %v1366_v51 = vpop.f32.mrf.mxu0 }
 0x162   : > { %1393 = vmatprep.mubr.msk.f32.mxu1 %vm693_vm2, %v666_v49  ;;  %v669_v54 = vmax.f32 %v1366_v51, 0.0 }
 0x163   : > { %v597_v52 = vpop.f32.mrf.mxu0  ;;  %1394 = vmatmul.mubr.msk.f32.vlgmr.msra.gmra.mxu1 %vm693_vm2, %v667_v50 }
 0x164   : > { %v668_v53 = vmax.f32 %v597_v52, 0.0 }
 0x165   : > { %v1369_v55 = vpop.f32.mrf.mxu0 }
 0x166   : > { %1396 = vmatprep.mubr.msk.f32.mxu1 %vm693_vm2, %v668_v53  ;;  %v671_v58 = vmax.f32 %v1369_v55, 0.0 }
 0x167   : > { %v607_v56 = vpop.f32.mrf.mxu0  ;;  %1397 = vmatmul.mubr.msk.f32.gmra.mxu1 %vm693_vm2, %v669_v54 }
 0x168   : > { %v670_v57 = vmax.f32 %v607_v56, 0.0 }
 0x169   : > { %v1372_v59 = vpop.f32.mrf.mxu0 }
 0x16a   : > { %v1375_v60 = vpop.f32.mrf.mxu1  ;;  %1399 = vmatprep.mubr.msk.f32.mxu1 %vm693_vm2, %v670_v57  ;;  %v673_v0 = vmax.f32 %v1372_v59, 0.0 }
 0x16b   : > { %v617_v61 = vpop.f32.mrf.mxu0  ;;  %1400 = vmatmul.mubr.msk.f32.gmra.mxu1 %vm693_vm2, %v671_v58  ;;  %v675_v4 = vmax.f32 %v1375_v60, 0.0 }
 0x16c   : > { %v672_v62 = vmax.f32 %v617_v61, 0.0  ;;  %v627_v63 = vpop.f32.mrf.mxu1 }
 0x16d   : > { %v674_v1 = vmax.f32 %v627_v63, 0.0 }
 0x16e   : > { %v1378_v2 = vpop.f32.mrf.mxu1  ;;  %1402 = vmatprep.mubr.msk.f32.mxu1 %vm693_vm2, %v672_v62 }
 0x16f   : > { %1403 = vmatmul.mubr.msk.f32.gmra.mxu1 %vm693_vm2, %v673_v0  ;;  %v677_v8 = vmax.f32 %v1378_v2, 0.0 }
 0x170   : > { %v637_v3 = vpop.f32.mrf.mxu1  ;;  %1405 = vmatprep.mubr.msk.f32.mxu1 %vm693_vm2, %v674_v1  ;;  %v1270_v1 = vld [vmem:[%s1913_s6] ss:$0 sm:$0xff] }
 0x171   : > { %v676_v5 = vmax.f32 %v637_v3, 0.0 }
 0x172   : > { %v1381_v6 = vpop.f32.mrf.mxu1 }
 0x173   : > { %1406 = vmatmul.mubr.msk.f32.gmra.mxu1 %vm693_vm2, %v675_v4  ;;  %v679_v12 = vmax.f32 %v1381_v6, 0.0 }
 0x174   : > { %v647_v7 = vpop.f32.mrf.mxu1  ;;  %1408 = vmatprep.mubr.msk.f32.mxu1 %vm693_vm2, %v676_v5 }
 0x175   : > { %v678_v9 = vmax.f32 %v647_v7, 0.0 }
 0x176   : > { %v1384_v10 = vpop.f32.mrf.mxu1 }
 0x177   : > { %1409 = vmatmul.mubr.msk.f32.gmra.mxu1 %vm693_vm2, %v677_v8  ;;  %v681_v14 = vmax.f32 %v1384_v10, 0.0 }
 0x178   : > { %v657_v11 = vpop.f32.mrf.mxu1  ;;  %1411 = vmatprep.mubr.msk.f32.mxu1 %vm693_vm2, %v678_v9 }
 0x179   : > { %v680_v13 = vmax.f32 %v657_v11, 0.0 }
 0x17b   : > { %1412 = vmatmul.mubr.msk.f32.gmra.mxu1 %vm693_vm2, %v679_v12 }
 0x17c   : > { %1414 = vmatprep.mubr.msk.f32.mxu1 %vm693_vm2, %v680_v13 }
 0x17f   : > { %1415 = vmatmul.mubr.msk.f32.gmra.mxu1 %vm693_vm2, %v681_v14 }
 0x223   : > { %v1395_v17 = vpop.f32.mrf.mxu1 }
 0x224   : > { %v814_v18 = vadd.f32 %v1395_v17, %v1253_v16 }
 0x225   : > { %v808_v19 = vpop.f32.mrf.mxu1 }
 0x226   : > { %v809_v20 = vadd.f32 %v1253_v16, %v808_v19  ;;  %v888_v23 = vmax.f32 %v814_v18, 0.0 }
 0x227   : > { %v1398_v21 = vpop.f32.mrf.mxu1 }
 0x228   : > { %v887_v22 = vmax.f32 %v809_v20, 0.0  ;;  %v824_v24 = vadd.f32 %v1398_v21, %v1253_v16 }
 0x229   : > { %v818_v25 = vpop.f32.mrf.mxu1 }
 0x22a   : > { %v819_v26 = vadd.f32 %v1253_v16, %v818_v25  ;;  %1425 = vmatprep.mubr.msk.f32.mxu0 %vm693_vm2, %v887_v22  ;;  %v890_v29 = vmax.f32 %v824_v24, 0.0 }
 0x22b   : > { %v1401_v27 = vpop.f32.mrf.mxu1  ;;  %1426 = vmatmul.mubr.msk.f32.vlgmr.msra.gmra.mxu0 %vm693_vm2, %v888_v23 }
 0x22c   : > { %v889_v28 = vmax.f32 %v819_v26, 0.0  ;;  %v834_v30 = vadd.f32 %v1401_v27, %v1253_v16 }
 0x22d   : > { %v828_v31 = vpop.f32.mrf.mxu1 }
 0x22e   : > { %v829_v32 = vadd.f32 %v1253_v16, %v828_v31  ;;  %1428 = vmatprep.mubr.msk.f32.mxu0 %vm693_vm2, %v889_v28  ;;  %v892_v35 = vmax.f32 %v834_v30, 0.0 }
 0x22f   : > { %v1404_v33 = vpop.f32.mrf.mxu1  ;;  %1429 = vmatmul.mubr.msk.f32.gmra.mxu0 %vm693_vm2, %v890_v29 }
 0x230   : > { %v891_v34 = vmax.f32 %v829_v32, 0.0  ;;  %v844_v36 = vadd.f32 %v1404_v33, %v1253_v16 }
 0x231   : > { %v838_v37 = vpop.f32.mrf.mxu1 }
 0x232   : > { %v839_v38 = vadd.f32 %v1253_v16, %v838_v37  ;;  %1431 = vmatprep.mubr.msk.f32.mxu0 %vm693_vm2, %v891_v34  ;;  %v894_v42 = vmax.f32 %v844_v36, 0.0 }
 0x233   : > { %v1407_v40 = vpop.f32.mrf.mxu1  ;;  %1432 = vmatmul.mubr.msk.f32.gmra.mxu0 %vm693_vm2, %v892_v35 }
 0x234   : > { %v893_v41 = vmax.f32 %v839_v38, 0.0  ;;  %v854_v44 = vadd.f32 %v1407_v40, %v1253_v16 }
 0x235   : > { %v848_v45 = vpop.f32.mrf.mxu1 }
 0x236   : > { %v849_v39 = vadd.f32 %v1253_v16, %v848_v45  ;;  %1434 = vmatprep.mubr.msk.f32.mxu0 %vm693_vm2, %v893_v41  ;;  %v896_v47 = vmax.f32 %v854_v44, 0.0 }
 0x237   : > { %v1410_v43 = vpop.f32.mrf.mxu1  ;;  %1435 = vmatmul.mubr.msk.f32.gmra.mxu0 %vm693_vm2, %v894_v42 }
 0x238   : > { %v895_v46 = vmax.f32 %v849_v39, 0.0  ;;  %v864_v48 = vadd.f32 %v1410_v43, %v1253_v16 }
 0x239   : > { %v858_v49 = vpop.f32.mrf.mxu1 }
 0x23a   : > { %v859_v50 = vadd.f32 %v1253_v16, %v858_v49  ;;  %1437 = vmatprep.mubr.msk.f32.mxu0 %vm693_vm2, %v895_v46  ;;  %v898_v53 = vmax.f32 %v864_v48, 0.0 }
 0x23b   : > { %v1413_v51 = vpop.f32.mrf.mxu1  ;;  %1438 = vmatmul.mubr.msk.f32.gmra.mxu0 %vm693_vm2, %v896_v47 }
 0x23c   : > { %v897_v52 = vmax.f32 %v859_v50, 0.0  ;;  %v874_v54 = vadd.f32 %v1413_v51, %v1253_v16 }
 0x23d   : > { %v868_v55 = vpop.f32.mrf.mxu1 }
 0x23e   : > { %v869_v56 = vadd.f32 %v1253_v16, %v868_v55  ;;  %1440 = vmatprep.mubr.msk.f32.mxu0 %vm693_vm2, %v897_v52  ;;  %v900_v59 = vmax.f32 %v874_v54, 0.0 }
 0x23f   : > { %v1416_v57 = vpop.f32.mrf.mxu1  ;;  %1441 = vmatmul.mubr.msk.f32.gmra.mxu0 %vm693_vm2, %v898_v53 }
 0x240   : > { %v899_v58 = vmax.f32 %v869_v56, 0.0  ;;  %v884_v60 = vadd.f32 %v1416_v57, %v1253_v16 }
 0x241   : > { %v878_v61 = vpop.f32.mrf.mxu1 }
 0x242   : > { %v879_v62 = vadd.f32 %v1253_v16, %v878_v61  ;;  %1443 = vmatprep.mubr.msk.f32.mxu0 %vm693_vm2, %v899_v58  ;;  %v902_v0 = vmax.f32 %v884_v60, 0.0 }
 0x243   : > { %1444 = vmatmul.mubr.msk.f32.gmra.mxu0 %vm693_vm2, %v900_v59 }
 0x244   : > { %v901_v63 = vmax.f32 %v879_v62, 0.0 }
 0x246   : > { %1446 = vmatprep.mubr.msk.f32.mxu0 %vm693_vm2, %v901_v63 }
 0x247   : > { %1447 = vmatmul.mubr.msk.f32.gmra.mxu0 %vm693_vm2, %v902_v0 }
 0x2eb   : > { %v1427_v2 = vpop.f32.mrf.mxu0 }
 0x2ec   : > { %v1034_v3 = vadd.f32 %v1427_v2, %v1270_v1 }
 0x2ed   : > { %v1028_v4 = vpop.f32.mrf.mxu0 }
 0x2ee   : > { %1108 = vst [vmem:[%s1838_s23 + $0x8] sm:$0xff] %v1034_v3  ;;  %v1029_v5 = vadd.f32 %v1270_v1, %v1028_v4 }
 0x2ef   : > { %v1430_v6 = vpop.f32.mrf.mxu0 }
 0x2f0   : > { %1107 = vst [vmem:[%s1838_s23] sm:$0xff] %v1029_v5  ;;  %v1044_v7 = vadd.f32 %v1430_v6, %v1270_v1 }
 0x2f1   : > { %v1038_v8 = vpop.f32.mrf.mxu0 }
 0x2f2   : > { %1110 = vst [vmem:[%s1838_s23 + $0x18] sm:$0xff] %v1044_v7  ;;  %v1039_v9 = vadd.f32 %v1270_v1, %v1038_v8 }
 0x2f3   : > { %v1433_v10 = vpop.f32.mrf.mxu0 }
 0x2f4   : > { %1109 = vst [vmem:[%s1838_s23 + $0x10] sm:$0xff] %v1039_v9  ;;  %v1054_v11 = vadd.f32 %v1433_v10, %v1270_v1 }
 0x2f5   : > { %v1048_v12 = vpop.f32.mrf.mxu0 }
 0x2f6   : > { %1112 = vst [vmem:[%s1838_s23 + $0x28] sm:$0xff] %v1054_v11  ;;  %v1049_v13 = vadd.f32 %v1270_v1, %v1048_v12 }
 0x2f7   : > { %v1436_v14 = vpop.f32.mrf.mxu0 }
 0x2f8   : > { %1111 = vst [vmem:[%s1838_s23 + $0x20] sm:$0xff] %v1049_v13  ;;  %v1064_v15 = vadd.f32 %v1436_v14, %v1270_v1 }
 0x2f9   : > { %v1058_v16 = vpop.f32.mrf.mxu0 }
 0x2fa   : > { %1114 = vst [vmem:[%s1838_s23 + $0x38] sm:$0xff] %v1064_v15  ;;  %v1059_v17 = vadd.f32 %v1270_v1, %v1058_v16 }
 0x2fb   : > { %v1439_v18 = vpop.f32.mrf.mxu0 }
 0x2fc   : > { %1113 = vst [vmem:[%s1838_s23 + $0x30] sm:$0xff] %v1059_v17  ;;  %v1074_v19 = vadd.f32 %v1439_v18, %v1270_v1 }
 0x2fd   : > { %v1068_v20 = vpop.f32.mrf.mxu0 }
 0x2fe   : > { %1116 = vst [vmem:[%s1838_s23 + $0x48] sm:$0xff] %v1074_v19  ;;  %v1069_v21 = vadd.f32 %v1270_v1, %v1068_v20 }
 0x2ff   : > { %v1442_v22 = vpop.f32.mrf.mxu0 }
 0x300   : > { %1115 = vst [vmem:[%s1838_s23 + $0x40] sm:$0xff] %v1069_v21  ;;  %v1084_v23 = vadd.f32 %v1442_v22, %v1270_v1 }
 0x301   : > { %v1078_v24 = vpop.f32.mrf.mxu0 }
 0x302   : > { %1118 = vst [vmem:[%s1838_s23 + $0x58] sm:$0xff] %v1084_v23  ;;  %v1079_v25 = vadd.f32 %v1270_v1, %v1078_v24 }
 0x303   : > { %v1445_v26 = vpop.f32.mrf.mxu0 }
 0x304   : > { %1117 = vst [vmem:[%s1838_s23 + $0x50] sm:$0xff] %v1079_v25  ;;  %v1094_v27 = vadd.f32 %v1445_v26, %v1270_v1 }
 0x305   : > { %v1088_v28 = vpop.f32.mrf.mxu0 }
 0x306   : > { %1120 = vst [vmem:[%s1838_s23 + $0x68] sm:$0xff] %v1094_v27  ;;  %v1089_v29 = vadd.f32 %v1270_v1, %v1088_v28 }
 0x307   : > { %v1448_v30 = vpop.f32.mrf.mxu0 }
 0x308   : > { %1119 = vst [vmem:[%s1838_s23 + $0x60] sm:$0xff] %v1089_v29  ;;  %v1104_v31 = vadd.f32 %v1448_v30, %v1270_v1 }
 0x309   : > { %v1098_v32 = vpop.f32.mrf.mxu0 }
 0x30a   : > { %1122 = vst [vmem:[%s1838_s23 + $0x78] sm:$0xff] %v1104_v31  ;;  %v1099_v33 = vadd.f32 %v1270_v1, %v1098_v32 }
 0x30c   : > { %1121 = vst [vmem:[%s1838_s23 + $0x70] sm:$0xff] %v1099_v33 }
 0x30d   : > { %1515 = shalt.err (!%p1512_p3)
}
 0x30e   : > { %s1516_s19 = scalar_lea.hbm %s1859_s16, 2048  ;;  %s1520_s22 = scalar_lea.hbm %s1914_s7, 4096 }
 0x30f   : > { %p1517_p4 = scmp.ne.s32.totalorder %s1859_s16, %s1516_s19  ;;  %p1521_p9 = scmp.lt.s32.totalorder %s1859_s16, %s1914_s7 }
 0x310   : > { %p1522_p10 = scmp.lt.s32.totalorder %s1520_s22, %s1516_s19 }
 0x311   : > { %p1518_p7 = pnand %p1517_p4, %p1647_p5 }
 0x312   : > { %p1523_p11 = por %p1522_p10, %p1521_p9 }
 0x313   : > { %p1519_p8 = pneg %p1518_p7 }
 0x315   : > { %p1524_p12 = pnand %p1523_p11, %p1519_p8 }
 0x317   : > { %1527 = shalt.err (!%p1524_p12)
}
 0x318   : > { %s1567_s9 = smov 128   ;;  %s1568_s15 = smov 8  }
 0x319   : > { %1457 = dma.vmem_to_hbm [thread:$0]  (%p1647_p5), %s1861_s8, 2048, %s1859_s16, %s1867_s28, %s1567_s9, %s1567_s9, %s1568_s15  }
 0x31a PF: > { %p1463_p13 = scmp.ge.s32.totalorder %s1562_s27, 2  ;;  %s1152_s17 = sand.u32 1, %s1550_s24  }
 0x31b   : > { %s1153_s18 = scalar_lea.sflag [#allocation3], %s1152_s17 }
 0x31c   : > { %p1460_p0 = pnand %p1463_p13, %p1651_p6 }
 0x31e   : > { %p1461_p1 = pneg %p1460_p0 }
 0x320   : > { %1545 = dma.done.wait (%p1461_p1), %s1153_s18, 2048  }
 0x321   : > { %1547 = vsyncadd (%p1461_p1), %s1153_s18, 4294965248  ;;  %p17_p2 = scmp.ge.s32.totalorder %s1634_s30, 4   ;;  %s1917_s24 = smov %s1554_s25 }
 0x322   : > { %s1918_s25 = smov %s1558_s26  ;;  %s1919_s26 = smov %s1645_s10 }
 0x323   : > { %s1920_s27 = smov %s1634_s30  ;;  %19 = sbr.rel (!%p17_p2) target bundleno = 3 (0x3), region = 86 }
 0x328   :  { %1158 = vsyncpa [#allocation3], 1 }
 0x329   :  { %1160 = vsyncpa [#allocation3 + $0x1], 1 }

</bundles_post_ra>
